<compile_context>
chip_gen: v7x
topology: tpu7x:2x2x1
jax: 0.10.0
libtpu: 0.0.40
codegen_flags: <defaults>
</compile_context>

<pallas_src>
import jax
import jax.numpy as jnp
from jax.experimental import pallas as pl
from jax.experimental.pallas import tpu as pltpu


def _predict_softmax_kernel(x_ref, wt_ref, b_ref, out_ref):
    # x_ref   : (row_tile, F_in)   -- tile of input features
    # wt_ref  : (F_in, F_out)      -- pre-transposed Linear weight (resident)
    # b_ref   : (1, F_out)         -- Linear bias (resident)
    # out_ref : (row_tile, F_out)
    # Linear: x @ W^T + b  (W already transposed in the wrapper -> plain MXU matmul).
    z = jnp.dot(x_ref[...], wt_ref[...], preferred_element_type=jnp.float32)
    z = z + b_ref[...]

    # Numerically-stable softmax along the last (class) axis, fused in-kernel.
    m = jnp.max(z, axis=-1, keepdims=True)
    e = jnp.exp(z - m)
    denom = jnp.sum(e, axis=-1, keepdims=True)
    out_ref[...] = (e * pl.reciprocal(denom)).astype(out_ref.dtype)


def predict_only_gcn_forward(dgl_feat, weight, bias, *, row_tile=128):
    """softmax(dgl_feat @ weight.T + bias, axis=-1) via a single Pallas kernel.

    dgl_feat : (N, F_in) float32
    weight   : (F_out, F_in) float32   (nn.Linear.weight layout)
    bias     : (F_out,)     float32    (nn.Linear.bias)
    """
    n, f_in = dgl_feat.shape
    f_out = weight.shape[0]

    # One-time layout prep in the wrapper (not repeated per grid step).
    w_t = jnp.transpose(weight)            # (F_in, F_out)
    b2 = bias.reshape(1, f_out)            # (1, F_out)

    # Pad the node axis to a multiple of the row tile; rows are independent so the
    # padded rows just produce throwaway softmax outputs that we slice off.
    n_pad = pl.cdiv(n, row_tile) * row_tile
    x = dgl_feat
    if n_pad != n:
        x = jnp.pad(dgl_feat, ((0, n_pad - n), (0, 0)))

    out = pl.pallas_call(
        _predict_softmax_kernel,
        out_shape=jax.ShapeDtypeStruct((n_pad, f_out), jnp.float32),
        grid_spec=pltpu.PrefetchScalarGridSpec(
            num_scalar_prefetch=0,
            grid=(n_pad // row_tile,),
            in_specs=[
                pl.BlockSpec((row_tile, f_in), lambda i: (i, 0)),   # feature row tile
                pl.BlockSpec((f_in, f_out), lambda i: (0, 0)),      # W^T (resident)
                pl.BlockSpec((1, f_out), lambda i: (0, 0)),         # bias (resident)
            ],
            out_specs=pl.BlockSpec((row_tile, f_out), lambda i: (i, 0)),
        ),
        compiler_params=pltpu.CompilerParams(
            dimension_semantics=("parallel",),   # v7x: split row tiles across 2 TCs
            vmem_limit_bytes=64 << 20,           # headroom past v5e's 16 MiB scoped default
        ),
    )(x, w_t, b2)

    if n_pad != n:
        out = out[:n]
    return out


if __name__ == "__main__":
    key = jax.random.PRNGKey(0)
    k_x, k_w, k_b = jax.random.split(key, 3)

    N = 256      # number of graph-level feature rows (e.g. pooled node features)
    F_IN = 64    # in_size
    F_OUT = 16   # out_size (number of classes)

    dgl_feat = jax.random.normal(k_x, (N, F_IN), dtype=jnp.float32)
    # nn.Linear(in_size, out_size) parameters, deterministic init.
    weight = jax.random.normal(k_w, (F_OUT, F_IN), dtype=jnp.float32) * 0.1
    bias = jax.random.normal(k_b, (F_OUT,), dtype=jnp.float32) * 0.1

    result = predict_only_gcn_forward(dgl_feat, weight, bias)
    jax.block_until_ready(result)

    # Pure-JAX reference: Linear -> Softmax(-1).
    ref = jax.nn.softmax(dgl_feat @ weight.T + bias, axis=-1)
    assert result.shape == (N, F_OUT)
    assert jnp.allclose(result, ref, atol=1e-5, rtol=1e-5)
    # Softmax rows must sum to 1.
    assert jnp.allclose(jnp.sum(result, axis=-1), 1.0, atol=1e-5)

    print("KERNEL_OK")
</pallas_src>

<mosaic_0001>
module attributes {stable_mosaic.version = 11 : i64} {
  func.func @_predict_softmax_kernel(%arg0: i32, %arg1: memref<128x64xf32, #tpu.memory_space<vmem>>, %arg2: memref<64x16xf32, #tpu.memory_space<vmem>>, %arg3: memref<1x16xf32, #tpu.memory_space<vmem>>, %arg4: memref<128x16xf32, #tpu.memory_space<vmem>>) attributes {dimension_semantics = [#tpu.dimension_semantics<parallel>], iteration_bounds = array<i64: 2>, scalar_prefetch = 0 : i64, scratch_operands = 0 : i64, tpu.core_type = #tpu.core_type<tc>, window_params = [{transform_indices = @transform_0, window_bounds = array<i64: 128, 64>}, {pipeline_mode = #tpu.pipeline_mode<synchronous>, transform_indices = @transform_1, window_bounds = array<i64: 64, 16>}, {pipeline_mode = #tpu.pipeline_mode<synchronous>, transform_indices = @transform_2, window_bounds = array<i64: 1, 16>}, {transform_indices = @transform_3, window_bounds = array<i64: 128, 16>}]} {
    %c0 = arith.constant 0 : index
    %c0_0 = arith.constant 0 : index
    %0 = vector.load %arg1[%c0, %c0_0] : memref<128x64xf32, #tpu.memory_space<vmem>>, vector<128x64xf32>
    %c0_1 = arith.constant 0 : index
    %c0_2 = arith.constant 0 : index
    %1 = vector.load %arg2[%c0_1, %c0_2] : memref<64x16xf32, #tpu.memory_space<vmem>>, vector<64x16xf32>
    %cst = arith.constant dense<0.000000e+00> : vector<128x16xf32>
    %2 = tpu.matmul %0, %1, %cst {dimension_numbers = #tpu.dot_dimension_numbers<[1], [0], [0], [1], [0, 0, 1, 1], [], []>} : vector<128x64xf32>, vector<64x16xf32>, vector<128x16xf32> -> vector<128x16xf32>
    %c0_3 = arith.constant 0 : index
    %c0_4 = arith.constant 0 : index
    %3 = vector.load %arg3[%c0_3, %c0_4] : memref<1x16xf32, #tpu.memory_space<vmem>>, vector<1x16xf32>
    %4 = vector.broadcast %3 : vector<1x16xf32> to vector<128x16xf32>
    %5 = arith.addf %2, %4 : vector<128x16xf32>
    %cst_5 = arith.constant dense<0xFF800000> : vector<128xf32>
    %6 = vector.multi_reduction <maximumf>, %5, %cst_5 [1] : vector<128x16xf32> to vector<128xf32>
    %7 = vector.shape_cast %6 : vector<128xf32> to vector<128x1xf32>
    %8 = vector.broadcast %7 : vector<128x1xf32> to vector<128x16xf32>
    %9 = arith.subf %5, %8 : vector<128x16xf32>
    %10 = math.exp %9 : vector<128x16xf32>
    %cst_6 = arith.constant dense<0.000000e+00> : vector<128xf32>
    %11 = vector.multi_reduction <add>, %10, %cst_6 [1] : vector<128x16xf32> to vector<128xf32>
    %12 = vector.shape_cast %11 : vector<128xf32> to vector<128x1xf32>
    %13 = tpu.reciprocal %12 : vector<128x1xf32> -> vector<128x1xf32>
    %14 = vector.broadcast %13 : vector<128x1xf32> to vector<128x16xf32>
    %15 = arith.mulf %10, %14 : vector<128x16xf32>
    %c0_7 = arith.constant 0 : index
    %c0_8 = arith.constant 0 : index
    %16 = vector.load %arg4[%c0_7, %c0_8] : memref<128x16xf32, #tpu.memory_space<vmem>>, vector<128x16xf32>
    tpu.vector_store %arg4[%c0_7, %c0_8], %15 {strides = array<i32>} : memref<128x16xf32, #tpu.memory_space<vmem>>, vector<128x16xf32>,
    return
  }
  func.func @transform_0(%arg0: i32) -> (i32, i32) {
    %c0_i32 = arith.constant 0 : i32
    %c0_i32_0 = arith.constant 0 : i32
    return %arg0, %c0_i32 : i32, i32
  }
  func.func @transform_1(%arg0: i32) -> (i32, i32) {
    %c0_i32 = arith.constant 0 : i32
    %c0_i32_0 = arith.constant 0 : i32
    %c0_i32_1 = arith.constant 0 : i32
    return %c0_i32, %c0_i32_0 : i32, i32
  }
  func.func @transform_2(%arg0: i32) -> (i32, i32) {
    %c0_i32 = arith.constant 0 : i32
    %c0_i32_0 = arith.constant 0 : i32
    %c0_i32_1 = arith.constant 0 : i32
    return %c0_i32, %c0_i32_0 : i32, i32
  }
  func.func @transform_3(%arg0: i32) -> (i32, i32) {
    %c0_i32 = arith.constant 0 : i32
    %c0_i32_0 = arith.constant 0 : i32
    return %arg0, %c0_i32 : i32, i32
  }
}

</mosaic_0001>

<bundles_post_ra>
// kernel: tpu_custom_call.1
= control target key start
LH: loop header
LB: loop body
LE: loop exit
PB: predicated region body
PF: predicated region fallthrough
CT: control target
= control target key end

     0   :  { %8 = vsyncpa [#allocation3], 0  ;;  %s1662_s0 = inlined_call_operand.hbm [shape: f32[256,64], index: 0, kind: input, shape index: {}]   ;;  %s1663_s1 = inlined_call_operand.hbm [shape: f32[64,16], index: 1, kind: input, shape index: {}]   ;;  %s1664_s2 = inlined_call_operand.hbm [shape: f32[1,16], index: 2, kind: input, shape index: {}]   ;;  %s1665_s3 = inlined_call_operand.hbm [shape: f32[256,16], index: 3, kind: output, shape index: {}]  }
   0x1   :  { %10 = vsyncpa [#allocation3 + $0x1], 0 }
   0x2   :  { %11 = vsyncpa [#allocation6], 0 }
   0x3   :  { %12 = vsyncpa [#allocation4], 0 }
   0x4   :  { %14 = vsyncpa [#allocation4 + $0x1], 0  ;;  %s1188_s12 = smov 0   ;;  %s1190_s13 = smov 0  }
   0x5   :  { %s1192_s14 = smov 0   ;;  %s1194_s15 = smov 0  }
   0x6 LB: > { %s1209_s16 = sadd.s32 4294967295, %s1158_s15   ;;  %s742_s17 = sadd.s32 4294967294, %s1158_s15   ;;  %s1158_s15 = sphi %s1194_s15, %s1685_s15   ;;  %s1154_s14 = sphi %s1192_s14, %s1684_s14   ;;  %s1150_s13 = sphi %s1190_s13, %s1683_s13   ;;  %s1146_s12 = sphi %s1188_s12, %s1682_s12  }
   0x7   : > { %p40_p0 = scmp.ne.s32.totalorder %s1150_s13, %s1146_s12  ;;  %p1666_p1 = scmp.eq.s32.totalorder %s1209_s16, 0 }
   0x8   : > { %p112_p3 = scmp.eq.s32.totalorder %s742_s17, 1  ;;  %p743_p5 = scmp.ge.s32.totalorder %s1158_s15, 1 }
   0x9   : > { %p1218_p4 = por %p1666_p1, %p40_p0  ;;  %p119_p7 = scmp.lt.s32.totalorder %s1158_s15, 3 }
   0xa   : > { %p1223_p6 = por %p112_p3, %p40_p0  ;;  %s1160_s21 = smov [#allocation5]  }
   0xb   : > { %s1669_s18 = scalar_select %p1218_p4, 1, 0 }
   0xc   : > { %s1670_s19 = scalar_select %p1223_p6, 1, 0 }
   0xd   : > { %p1228_p8 = pnand %p743_p5, %p119_p7  ;;  %s131_s22 = sshll.u32 %s1160_s21, 4  ;;  %s1232_s22 = int_to_ptr.vmem [resolvable:$true] %s131_s22 }
   0xe   : > { %s1161_s24 = smov [#allocation7]   ;;  %s1002_s28 = scalar_lea.hbm %s1663_s1, 1024 }
   0xf   : > { %p879_p9 = pneg %p1228_p8  ;;  %s145_s25 = sshll.u32 %s1161_s24, 4  ;;  %s1243_s25 = int_to_ptr.vmem [resolvable:$true] %s145_s25 }
  0x10   : > { %p1003_p12 = scmp.ne.s32.totalorder %s1663_s1, %s1002_s28  ;;  %p1009_p5 = scmp.lt.u32.totalorder %s1002_s28, %s1663_s1 }
  0x11   : > { %p1239_p11 = pnand %p879_p9, %p1666_p1 }
  0x13   : > { %p1004_p13 = pneg %p1239_p11 }
  0x15   : > { %p1005_p0 = pnand %p1004_p13, %p1003_p12 }
  0x17   : > { %p1006_p3 = pneg %p1005_p0 }
  0x19   : > { %p1011_p7 = pnand %p1009_p5, %p1006_p3 }
  0x1b   : > { %1014 = shalt.err (!%p1011_p7)
}
  0x1c   : > { %s1015_s6 = scalar_lea.vmem %s1232_s22, 1024  ;;  %p1023_p2 = scmp.lt.s32.totalorder %s1232_s22, %s1232_s22 }
  0x1d   : > { %p1016_p9 = scmp.ne.s32.totalorder %s1232_s22, %s1015_s6  ;;  %p1024_p12 = scmp.lt.s32.totalorder %s1015_s6, %s1015_s6 }
  0x1f   : > { %p1018_p10 = pnand %p1016_p9, %p1004_p13  ;;  %p1025_p0 = por %p1024_p12, %p1023_p2 }
  0x21   : > { %p1019_p1 = pneg %p1018_p10 }
  0x23   : > { %p1026_p6 = pnand %p1025_p0, %p1019_p1 }
  0x25   : > { %1029 = shalt.err (!%p1026_p6)
}
  0x26   : > { %s1162_s7 = smov 128   ;;  %s1163_s8 = smov 8  }
  0x27   : > { %882 = dma.hbm_to_vmem [thread:$0]  (!%p1239_p11), %s1663_s1, 1024, %s1232_s22, [#allocation6], %s1162_s7, %s1162_s7, %s1163_s8  }
  0x28   : > { %s1030_s21 = scalar_lea.hbm %s1664_s2, 16 }
  0x29   : > { %p1031_p1 = scmp.ne.s32.totalorder %s1664_s2, %s1030_s21  ;;  %p1037_p10 = scmp.lt.u32.totalorder %s1030_s21, %s1664_s2 }
  0x2b   : > { %p1033_p2 = pnand %p1031_p1, %p1004_p13 }
  0x2d   : > { %p1034_p6 = pneg %p1033_p2 }
  0x2f   : > { %p1039_p3 = pnand %p1037_p10, %p1034_p6 }
  0x31   : > { %1042 = shalt.err (!%p1039_p3)
}
  0x32   : > { %s1043_s22 = scalar_lea.vmem %s1243_s25, 16  ;;  %s1050_s29 = scalar_lea.vmem %s1243_s25, 32 }
  0x33   : > { %p1044_p5 = scmp.ne.s32.totalorder %s1243_s25, %s1043_s22  ;;  %p1051_p12 = scmp.lt.s32.totalorder %s1243_s25, %s1243_s25 }
  0x34   : > { %p1052_p0 = scmp.lt.s32.totalorder %s1050_s29, %s1043_s22 }
  0x35   : > { %p1046_p7 = pnand %p1044_p5, %p1004_p13 }
  0x36   : > { %p1053_p1 = por %p1052_p0, %p1051_p12 }
  0x37   : > { %p1047_p9 = pneg %p1046_p7 }
  0x39   : > { %p1054_p2 = pnand %p1053_p1, %p1047_p9 }
  0x3b   : > { %1057 = shalt.err (!%p1054_p2)
}
  0x3c   : > { %885 = dma.hbm_to_vmem [thread:$0]  (!%p1239_p11), %s1664_s2, 16, %s1243_s25, [#allocation6]  }
  0x3d   : > { %s1302_s5 = sadd.s32 1, %s1158_s15   ;;  %s27_s23 = sadd.s32 1, %s1154_s14 }
  0x3e   : > { %s24_s6 = ssub.s32 %s1158_s15, %s1302_s5  ;;  %p34_p13 = scmp.ne.s32.totalorder %s1154_s14, %s1150_s13 }
  0x3f   : > { %p25_p6 = scmp.eq.s32.totalorder %s24_s6, 0  ;;  %p35_p10 = scmp.eq.s32.totalorder %s1158_s15, 0 }
  0x40   : > { %p1673_p3 = scmp.eq.s32.totalorder %s1209_s16, 1  ;;  %p896_p7 = scmp.lt.s32.totalorder %s1158_s15, 2 }
  0x41   : > { %s1318_s10 = scalar_select %p25_p6, %s1154_s14, %s27_s23  }
  0x42   : > { %p1312_p5 = por %p1673_p3, %p34_p13  ;;  %p36_p9 = por %p35_p10, %p34_p13 }
  0x43   : > { %s156_s11 = sand.u32 1, %s1154_s14   ;;  %s777_s25 = sshll.u32 %s1158_s15, 11 }
  0x44   : > { %s1674_s9 = scalar_select %p1312_p5, 1, 0 }
  0x45   : > { %s747_s17 = sshll.u32 %s156_s11, 7  ;;  %s1325_s26 = scalar_lea.hbm %s1662_s0, %s777_s25 }
  0x46   : > { %s160_s27 = scalar_lea.vmem [#allocation2], %s747_s17  ;;  %p1329_p11 = pnand %p896_p7, %p36_p9 }
  0x47   : > { %s167_s28 = sshll.u32 %s160_s27, 4  ;;  %s1333_s29 = scalar_lea.sflag [#allocation3], %s156_s11  ;;  %s1327_s28 = int_to_ptr.vmem [resolvable:$true] %s167_s28 }
  0x48   : > { %s1058_s30 = scalar_lea.hbm %s1325_s26, 2048  ;;  %p1060_p0 = pneg %p1329_p11 }
  0x49   : > { %p1059_p12 = scmp.ne.s32.totalorder %s1325_s26, %s1058_s30  ;;  %s1063_s6 = scalar_lea.hbm %s1662_s0, 4096 }
  0x4a   : > { %p1064_p13 = scmp.lt.u32.totalorder %s1325_s26, %s1662_s0  ;;  %p1065_p6 = scmp.lt.u32.totalorder %s1063_s6, %s1058_s30 }
  0x4b   : > { %p1061_p1 = pnand %p1060_p0, %p1059_p12  ;;  %p1067_p3 = scmp.lt.u32.totalorder %s1058_s30, %s1325_s26 }
  0x4c   : > { %p1066_p10 = por %p1065_p6, %p1064_p13 }
  0x4d   : > { %p1062_p2 = pneg %p1061_p1 }
  0x4e   : > { %p1068_p7 = por %p1067_p3, %p1066_p10 }
  0x50   : > { %p1069_p9 = pnand %p1068_p7, %p1062_p2 }
  0x52   : > { %1072 = shalt.err (!%p1069_p9)
}
  0x53   : > { %s1073_s11 = scalar_lea.vmem %s1327_s28, 2048  ;;  %s1164_s21 = smov [#allocation2]  }
  0x54   : > { %p1074_p12 = scmp.ne.s32.totalorder %s1327_s28, %s1073_s11  ;;  %s1078_s24 = sshll.u32 %s1164_s21, 4  ;;  %s1079_s24 = int_to_ptr.vmem [resolvable:$false] %s1078_s24 }
  0x55   : > { %s1080_s27 = scalar_lea.vmem %s1079_s24, 4096  ;;  %p1081_p4 = scmp.lt.s32.totalorder %s1327_s28, %s1079_s24 }
  0x56   : > { %p1076_p1 = pnand %p1074_p12, %p1060_p0  ;;  %p1082_p13 = scmp.lt.s32.totalorder %s1080_s27, %s1073_s11 }
  0x58   : > { %p1077_p5 = pneg %p1076_p1  ;;  %p1083_p6 = por %p1082_p13, %p1081_p4 }
  0x5a   : > { %p1084_p10 = pnand %p1083_p6, %p1077_p5 }
  0x5c   : > { %1087 = shalt.err (!%p1084_p10)
}
  0x5d   : > { %889 = dma.hbm_to_vmem [thread:$0]  (!%p1329_p11), %s1325_s26, 2048, %s1327_s28, %s1333_s29, %s1162_s7, %s1162_s7, %s1163_s8  }
  0x5e   : > { %179 = sbr.rel (%p1228_p8) target bundleno = 700 (0x2bc), region = 32  ;;  %s1367_s30 = sand.u32 (!%p1228_p8), 1, %s1150_s13  }
  0x5f   : > { %s751_s4 = sshll.u32 (!%p1228_p8), %s1367_s30, 7  ;;  %s182_s23 = scalar_lea.sflag (!%p1228_p8), [#allocation3], %s1367_s30 }
  0x60   : > { %s1373_s22 = scalar_lea.vmem (!%p1228_p8), [#allocation2], %s751_s4  ;;  %p1676_p4 = scmp.ne.s32.totalorder (!%p1228_p8), %s1669_s18, 0 }
  0x65   : > { %1133 = dma.done.wait (%p1676_p4), %s182_s23, 2048  }
  0x66   : > { %1135 = vsyncadd (%p1676_p4), %s182_s23, 4294965248  ;;  %p1677_p5 = scmp.eq.s32.totalorder %s1209_s16, 0 }
  0x68   : > { %1137 = dma.done.wait (%p1677_p5), [#allocation6], 1040   ;;  %p1678_p8 = pmov %p1677_p5 }
  0x69   : > { %v234_v0 = vld [vmem:[#allocation5] sm:$0xff]  ;;  %v235_v1 = vld [vmem:[#allocation5 + $0x8] sm:$0xff]  ;;  %v236_v2 = vld [vmem:[#allocation5 + $0x10] sm:$0xff]  ;;  %vm249_vm0 = vcmask 523264   ;;  %vm443_vm1 = vcmask 130048   ;;  %s1562_s18 = scalar_lea.vmem [#allocation8], %s751_s4 }
  0x6a   : > { %1139 = vsyncadd (%p1678_p8), [#allocation6], 4294966256  ;;  %v843_v3 = vpack.c.bf16 %v235_v1, %v234_v0  ;;  %v237_v4 = vld [vmem:[#allocation5 + $0x18] sm:$0xff]  ;;  %v238_v6 = vld [vmem:[#allocation5 + $0x20] sm:$0xff]  ;;  %s778_s20 = sshll.u32 %s1209_s16, 11  ;;  %s650_s7 = sshll.u32 %s1562_s18, 4  ;;  %s1615_s7 = int_to_ptr.vmem [resolvable:$true] %s650_s7 }
  0x6b   : > { %v847_v5 = vpack.c.bf16 %v237_v4, %v236_v2  ;;  %v239_v7 = vld [vmem:[#allocation5 + $0x28] sm:$0xff]  ;;  %v218_v8 = vld [vmem:[%s1373_s22] sm:$0xff]  ;;  %v240_v11 = vld [vmem:[#allocation5 + $0x30] sm:$0xff]  ;;  %s1613_s28 = scalar_lea.hbm %s1665_s3, %s778_s20  ;;  %s637_s16 = scalar_lea.sflag [#allocation4], %s1367_s30 }
  0x6c   : > { %844 = vmatprep.subr.bf16.mxu0 %v843_v3  ;;  %859 = vmatprep.subr.bf16.mxu1 %v843_v3  ;;  %v226_v9 = vld [vmem:[%s1373_s22 + $0x40] sm:$0xff]  ;;  %v851_v10 = vpack.c.bf16 %v239_v7, %v238_v6  ;;  %v241_v12 = vld [vmem:[#allocation5 + $0x38] sm:$0xff]  ;;  %v219_v14 = vld [vmem:[%s1373_s22 + $0x8] sm:$0xff]  ;;  %s1088_s29 = scalar_lea.vmem %s1615_s7, 2048  ;;  %p1679_p0 = scmp.ne.s32.totalorder %s1674_s9, 0 }
  0x6d   : > { %846 = vmatpush3.bf16.msra.mxu0 %v843_v3  ;;  %863 = vmatpush3.bf16.msra.mxu1 %v843_v3  ;;  %v855_v13 = vpack.c.bf16 %v241_v12, %v240_v11  ;;  %v227_v15 = vld [vmem:[%s1373_s22 + $0x48] sm:$0xff]  ;;  %v220_v16 = vld [vmem:[%s1373_s22 + $0x10] sm:$0xff]  ;;  %v221_v18 = vld [vmem:[%s1373_s22 + $0x18] sm:$0xff]  ;;  %p1089_p11 = scmp.ne.s32.totalorder %s1615_s7, %s1088_s29  ;;  %s1165_s6 = smov [#allocation8]  }
  0x6e   : > { %848 = vmatprep.subr.bf16.mxu0 %v847_v5  ;;  %860 = vmatprep.subr.bf16.mxu1 %v847_v5  ;;  %v228_v17 = vld [vmem:[%s1373_s22 + $0x50] sm:$0xff]  ;;  %v229_v19 = vld [vmem:[%s1373_s22 + $0x58] sm:$0xff]  ;;  %v222_v20 = vld [vmem:[%s1373_s22 + $0x20] sm:$0xff]  ;;  %s1092_s17 = sshll.u32 %s1165_s6, 4  ;;  %s1093_s17 = int_to_ptr.vmem [resolvable:$false] %s1092_s17 }
  0x6f   : > { %819 = vmatprep.mubr.msk.f32.mxu0 %vm249_vm0, %v218_v8  ;;  %831 = vmatprep.mubr.msk.f32.mxu1 %vm249_vm0, %v226_v9  ;;  %v230_v21 = vld [vmem:[%s1373_s22 + $0x60] sm:$0xff]  ;;  %v223_v22 = vld [vmem:[%s1373_s22 + $0x28] sm:$0xff]  ;;  %v224_v24 = vld [vmem:[%s1373_s22 + $0x30] sm:$0xff]  ;;  %p1090_p2 = pnand %p1089_p11, %p1679_p0  ;;  %s1094_s25 = scalar_lea.vmem %s1093_s17, 4096 }
  0x70   : > { %v231_v23 = vld [vmem:[%s1373_s22 + $0x68] sm:$0xff]  ;;  %v232_v25 = vld [vmem:[%s1373_s22 + $0x70] sm:$0xff]  ;;  %v225_v26 = vld [vmem:[%s1373_s22 + $0x38] sm:$0xff]  ;;  %p1095_p7 = scmp.lt.s32.totalorder %s1615_s7, %s1093_s17  ;;  %p1096_p9 = scmp.lt.s32.totalorder %s1094_s25, %s1088_s29 }
  0x71   : > { %850 = vmatpush3.bf16.msra.mxu0 %v847_v5  ;;  %864 = vmatpush3.bf16.msra.mxu1 %v847_v5  ;;  %v233_v27 = vld [vmem:[%s1373_s22 + $0x78] sm:$0xff]  ;;  %v755_v28 = vld [vmem:[#allocation7] ss:$0 sm:$0xff]  ;;  %p1091_p3 = pneg %p1090_p2 }
  0x72   : > { %852 = vmatprep.subr.bf16.mxu0 %v851_v10  ;;  %861 = vmatprep.subr.bf16.mxu1 %v851_v10  ;;  %p1097_p12 = por %p1096_p9, %p1095_p7 }
  0x74   : > { %p1098_p1 = pnand %p1097_p12, %p1091_p3 }
  0x75   : > { %854 = vmatpush3.bf16.msra.mxu0 %v851_v10  ;;  %865 = vmatpush3.bf16.msra.mxu1 %v851_v10 }
  0x76   : > { %856 = vmatprep.subr.bf16.mxu0 %v855_v13  ;;  %862 = vmatprep.subr.bf16.mxu1 %v855_v13 }
  0x79   : > { %858 = vmatpush3.bf16.msra.mxu0 %v855_v13  ;;  %866 = vmatpush3.bf16.msra.mxu1 %v855_v13 }
  0x7c   : > { %820 = vmatmul.mubr.msk.f32.vlgmr.msra.gmra.mrb[0].mxu0 %vm249_vm0, %v219_v14  ;;  %832 = vmatmul.mubr.msk.f32.vlgmr.msra.gmra.mrb[0].mxu1 %vm249_vm0, %v227_v15 }
  0x7d   : > { %822 = vmatprep.mubr.msk.f32.mxu0 %vm249_vm0, %v220_v16  ;;  %834 = vmatprep.mubr.msk.f32.mxu1 %vm249_vm0, %v228_v17 }
  0x80   : > { %823 = vmatmul.mubr.msk.f32.gmra.mrb[2].mxu0 %vm249_vm0, %v221_v18  ;;  %835 = vmatmul.mubr.msk.f32.gmra.mrb[2].mxu1 %vm249_vm0, %v229_v19 }
  0x81   : > { %825 = vmatprep.mubr.msk.f32.mxu0 %vm249_vm0, %v222_v20  ;;  %837 = vmatprep.mubr.msk.f32.mxu1 %vm249_vm0, %v230_v21 }
  0x84   : > { %826 = vmatmul.mubr.msk.f32.gmra.mrb[4].mxu0 %vm249_vm0, %v223_v22  ;;  %838 = vmatmul.mubr.msk.f32.gmra.mrb[4].mxu1 %vm249_vm0, %v231_v23 }
  0x85   : > { %828 = vmatprep.mubr.msk.f32.mxu0 %vm249_vm0, %v224_v24  ;;  %840 = vmatprep.mubr.msk.f32.mxu1 %vm249_vm0, %v232_v25 }
  0x88   : > { %829 = vmatmul.mubr.msk.f32.gmra.mrb[6].mxu0 %vm249_vm0, %v225_v26  ;;  %841 = vmatmul.mubr.msk.f32.gmra.mrb[6].mxu1 %vm249_vm0, %v233_v27 }
 0x14f   : > { %v821_v29 = vpop.f32.mrb[0].mxu0  ;;  %v833_v30 = vpop.f32.mrb[0].mxu1 }
 0x150   : > { %v1415_v31 = vadd.f32 %v821_v29, %v755_v28  ;;  %v1417_v32 = vadd.f32 %v833_v30, %v755_v28  ;;  %v364_v33 = vpop.f32.mrb[1].mxu0  ;;  %v404_v34 = vpop.f32.mrb[1].mxu1 }
 0x151   : > { %v1419_v35 = vadd.f32 %v755_v28, %v364_v33  ;;  %v1429_v44 = vadd.f32 %v755_v28, %v404_v34 }
 0x152   : > { %v471_v36 = vsel %vm443_vm1, %v1417_v32, -inf  ;;  %v447_v37 = vsel %vm443_vm1, %v1415_v31, -inf }
 0x153   : > { %472 = vmax.xlane.f32.xlu1 %v471_v36  ;;  %448 = vmax.xlane.f32.xlu0 %v447_v37  ;;  %v824_v38 = vpop.f32.mrb[2].mxu0  ;;  %v836_v39 = vpop.f32.mrb[2].mxu1  ;;  %v444_v46 = vsel %vm443_vm1, %v1419_v35, -inf  ;;  %v468_v54 = vsel %vm443_vm1, %v1429_v44, -inf }
 0x154   : > { %v1425_v40 = vadd.f32 %v824_v38, %v755_v28  ;;  %v374_v41 = vpop.f32.mrb[3].mxu0  ;;  %v1427_v42 = vadd.f32 %v836_v39, %v755_v28  ;;  %v414_v43 = vpop.f32.mrb[3].mxu1 }
 0x155   : > { %v1437_v52 = vadd.f32 %v755_v28, %v374_v41  ;;  %v1439_v53 = vadd.f32 %v755_v28, %v414_v43 }
 0x156   : > { %v453_v45 = vsel %vm443_vm1, %v1425_v40, -inf  ;;  %v477_v49 = vsel %vm443_vm1, %v1427_v42, -inf }
 0x157   : > { %454 = vmax.xlane.f32.xlu1 %v453_v45  ;;  %445 = vmax.xlane.f32.xlu0 %v444_v46  ;;  %v827_v47 = vpop.f32.mrb[4].mxu0  ;;  %v839_v48 = vpop.f32.mrb[4].mxu1  ;;  %v450_v61 = vsel %vm443_vm1, %v1437_v52, -inf  ;;  %v474_v62 = vsel %vm443_vm1, %v1439_v53, -inf }
 0x158   : > { %v384_v50 = vpop.f32.mrb[5].mxu0  ;;  %v424_v51 = vpop.f32.mrb[5].mxu1  ;;  %v1443_v57 = vadd.f32 %v827_v47, %v755_v28  ;;  %v1451_v63 = vadd.f32 %v839_v48, %v755_v28 }
 0x159   : > { %v1445_v58 = vadd.f32 %v755_v28, %v384_v50  ;;  %v1453_v0 = vadd.f32 %v755_v28, %v424_v51 }
 0x15a   : > { %v459_v1 = vsel %vm443_vm1, %v1443_v57, -inf  ;;  %v483_v5 = vsel %vm443_vm1, %v1451_v63, -inf }
 0x15b   : > { %478 = vmax.xlane.f32.xlu1 %v477_v49  ;;  %469 = vmax.xlane.f32.xlu0 %v468_v54  ;;  %v830_v55 = vpop.f32.mrb[6].mxu0  ;;  %v842_v56 = vpop.f32.mrb[6].mxu1  ;;  %v456_v2 = vsel %vm443_vm1, %v1445_v58, -inf  ;;  %v480_v6 = vsel %vm443_vm1, %v1453_v0, -inf }
 0x15c   : > { %v394_v59 = vpop.f32.mrb[7].mxu0  ;;  %v434_v60 = vpop.f32.mrb[7].mxu1  ;;  %v1459_v3 = vadd.f32 %v830_v55, %v755_v28  ;;  %v1467_v7 = vadd.f32 %v842_v56, %v755_v28 }
 0x15d   : > { %v1461_v4 = vadd.f32 %v755_v28, %v394_v59  ;;  %v1469_v8 = vadd.f32 %v755_v28, %v434_v60 }
 0x15e   : > { %v465_v9 = vsel %vm443_vm1, %v1459_v3, -inf  ;;  %v489_v11 = vsel %vm443_vm1, %v1467_v7, -inf }
 0x15f   : > { %451 = vmax.xlane.f32.xlu1 %v450_v61  ;;  %475 = vmax.xlane.f32.xlu0 %v474_v62  ;;  %v462_v10 = vsel %vm443_vm1, %v1461_v4, -inf  ;;  %v486_v12 = vsel %vm443_vm1, %v1469_v8, -inf }
 0x163   : > { %460 = vmax.xlane.f32.xlu1 %v459_v1  ;;  %457 = vmax.xlane.f32.xlu0 %v456_v2 }
 0x167   : > { %484 = vmax.xlane.f32.xlu1 %v483_v5  ;;  %481 = vmax.xlane.f32.xlu0 %v480_v6 }
 0x16b   : > { %466 = vmax.xlane.f32.xlu1 %v465_v9  ;;  %463 = vmax.xlane.f32.xlu0 %v462_v10 }
 0x16f   : > { %490 = vmax.xlane.f32.xlu1 %v489_v11  ;;  %487 = vmax.xlane.f32.xlu0 %v486_v12 }
 0x1e0   : > { %v473_v13 = vpop.xlane.xlu1 %472  ;;  %v449_v14 = vpop.xlane.xlu0 %448 }
 0x1e1   : > { %v501_v15 = vsub.f32 %v1417_v32, %v473_v13  ;;  %v493_v16 = vsub.f32 %v1415_v31, %v449_v14 }
 0x1e3   : > { %v526_v17 = vmul.f32 1.442695, %v501_v15  ;;  %v510_v18 = vmul.f32 1.442695, %v493_v16 }
 0x1e4   : > { %v455_v19 = vpop.xlane.xlu1 %454  ;;  %v446_v20 = vpop.xlane.xlu0 %445 }
 0x1e5   : > { %v495_v21 = vsub.f32 %v1425_v40, %v455_v19  ;;  %v492_v22 = vsub.f32 %v1419_v35, %v446_v20  ;;  %938 = vpow2.f32 %v510_v18 }
 0x1e6   : > { %940 = vpow2.f32 %v526_v17 }
 0x1e7   : > { %v514_v23 = vmul.f32 1.442695, %v495_v21  ;;  %v508_v24 = vmul.f32 1.442695, %v492_v22 }
 0x1e8   : > { %v479_v25 = vpop.xlane.xlu1 %478  ;;  %v470_v26 = vpop.xlane.xlu0 %469 }
 0x1e9   : > { %v503_v27 = vsub.f32 %v1427_v42, %v479_v25  ;;  %v500_v28 = vsub.f32 %v1429_v44, %v470_v26  ;;  %942 = vpow2.f32 %v508_v24 }
 0x1ea   : > { %944 = vpow2.f32 %v514_v23 }
 0x1eb   : > { %v524_v29 = vmul.f32 1.442695, %v500_v28  ;;  %v530_v30 = vmul.f32 1.442695, %v503_v27 }
 0x1ec   : > { %v452_v31 = vpop.xlane.xlu1 %451  ;;  %v476_v32 = vpop.xlane.xlu0 %475 }
 0x1ed   : > { %v494_v33 = vsub.f32 %v1437_v52, %v452_v31  ;;  %v502_v34 = vsub.f32 %v1439_v53, %v476_v32  ;;  %946 = vpow2.f32 %v524_v29 }
 0x1ee   : > { %948 = vpow2.f32 %v530_v30 }
 0x1ef   : > { %v512_v35 = vmul.f32 1.442695, %v494_v33  ;;  %v1487_v36 = vpop.eup %938  ;;  %v528_v37 = vmul.f32 1.442695, %v502_v34 }
 0x1f0   : > { %v461_v38 = vpop.xlane.xlu1 %460  ;;  %v458_v39 = vpop.xlane.xlu0 %457  ;;  %v543_v43 = vsel %vm443_vm1, %v1487_v36, 0.0 }
 0x1f1   : > { %v1489_v40 = vpop.eup %940  ;;  %950 = vpow2.f32 %v512_v35  ;;  %v497_v41 = vsub.f32 %v1443_v57, %v461_v38  ;;  %v496_v42 = vsub.f32 %v1445_v58, %v458_v39  ;;  %544 = vadd.xlane.f32.xlu1 %v543_v43 }
 0x1f2   : > { %952 = vpow2.f32 %v528_v37  ;;  %v567_v49 = vsel %vm443_vm1, %v1489_v40, 0.0 }
 0x1f3   : > { %v518_v44 = vmul.f32 1.442695, %v497_v41  ;;  %v1495_v45 = vpop.eup %942  ;;  %v516_v46 = vmul.f32 1.442695, %v496_v42 }
 0x1f4   : > { %v485_v47 = vpop.xlane.xlu1 %484  ;;  %v482_v48 = vpop.xlane.xlu0 %481  ;;  %v540_v53 = vsel %vm443_vm1, %v1495_v45, 0.0 }
 0x1f5   : > { %v1499_v50 = vpop.eup %944  ;;  %954 = vpow2.f32 %v518_v44  ;;  %v505_v51 = vsub.f32 %v1451_v63, %v485_v47  ;;  %v504_v52 = vsub.f32 %v1453_v0, %v482_v48  ;;  %568 = vadd.xlane.f32.xlu1 %v567_v49  ;;  %541 = vadd.xlane.f32.xlu0 %v540_v53 }
 0x1f6   : > { %956 = vpow2.f32 %v516_v46  ;;  %v549_v59 = vsel %vm443_vm1, %v1499_v50, 0.0 }
 0x1f7   : > { %v534_v54 = vmul.f32 1.442695, %v505_v51  ;;  %v1505_v55 = vpop.eup %946  ;;  %v532_v56 = vmul.f32 1.442695, %v504_v52 }
 0x1f8   : > { %v467_v57 = vpop.xlane.xlu1 %466  ;;  %v464_v58 = vpop.xlane.xlu0 %463  ;;  %v564_v62 = vsel %vm443_vm1, %v1505_v55, 0.0 }
 0x1f9   : > { %958 = vpow2.f32 %v534_v54  ;;  %v499_v60 = vsub.f32 %v1459_v3, %v467_v57  ;;  %v498_v61 = vsub.f32 %v1461_v4, %v464_v58  ;;  %v1513_v63 = vpop.eup %948  ;;  %550 = vadd.xlane.f32.xlu1 %v549_v59  ;;  %565 = vadd.xlane.f32.xlu0 %v564_v62 }
 0x1fa   : > { %960 = vpow2.f32 %v532_v56  ;;  %v573_v10 = vsel %vm443_vm1, %v1513_v63, 0.0 }
 0x1fb   : > { %v1515_v0 = vpop.eup %950  ;;  %v522_v1 = vmul.f32 1.442695, %v499_v60  ;;  %v520_v2 = vmul.f32 1.442695, %v498_v61 }
 0x1fc   : > { %v491_v5 = vpop.xlane.xlu1 %490  ;;  %v488_v6 = vpop.xlane.xlu0 %487  ;;  %v546_v9 = vsel %vm443_vm1, %v1515_v0, 0.0 }
 0x1fd   : > { %962 = vpow2.f32 %v522_v1  ;;  %v507_v3 = vsub.f32 %v1467_v7, %v491_v5  ;;  %v506_v4 = vsub.f32 %v1469_v8, %v488_v6  ;;  %v1523_v11 = vpop.eup %952  ;;  %574 = vadd.xlane.f32.xlu1 %v573_v10  ;;  %547 = vadd.xlane.f32.xlu0 %v546_v9 }
 0x1fe   : > { %964 = vpow2.f32 %v520_v2  ;;  %v570_v7 = vsel %vm443_vm1, %v1523_v11, 0.0 }
 0x1ff   : > { %v1525_v12 = vpop.eup %954  ;;  %v538_v13 = vmul.f32 1.442695, %v507_v3  ;;  %v536_v14 = vmul.f32 1.442695, %v506_v4 }
 0x200   : > { %v555_v15 = vsel %vm443_vm1, %v1525_v12, 0.0  ;;  %v1531_v8 = vpop.eup %956 }
 0x201   : > { %966 = vpow2.f32 %v538_v13  ;;  %556 = vadd.xlane.f32.xlu1 %v555_v15  ;;  %571 = vadd.xlane.f32.xlu0 %v570_v7  ;;  %v552_v18 = vsel %vm443_vm1, %v1531_v8, 0.0 }
 0x202   : > { %968 = vpow2.f32 %v536_v14 }
 0x203   : > { %v1533_v16 = vpop.eup %958 }
 0x204   : > { %v579_v17 = vsel %vm443_vm1, %v1533_v16, 0.0  ;;  %v1539_v19 = vpop.eup %960 }
 0x205   : > { %580 = vadd.xlane.f32.xlu1 %v579_v17  ;;  %553 = vadd.xlane.f32.xlu0 %v552_v18  ;;  %v576_v22 = vsel %vm443_vm1, %v1539_v19, 0.0 }
 0x207   : > { %v1541_v20 = vpop.eup %962 }
 0x208   : > { %v561_v21 = vsel %vm443_vm1, %v1541_v20, 0.0  ;;  %v1547_v23 = vpop.eup %964 }
 0x209   : > { %562 = vadd.xlane.f32.xlu1 %v561_v21  ;;  %577 = vadd.xlane.f32.xlu0 %v576_v22  ;;  %v558_v26 = vsel %vm443_vm1, %v1547_v23, 0.0 }
 0x20b   : > { %v1549_v24 = vpop.eup %966 }
 0x20c   : > { %v585_v25 = vsel %vm443_vm1, %v1549_v24, 0.0  ;;  %v1555_v27 = vpop.eup %968 }
 0x20d   : > { %586 = vadd.xlane.f32.xlu1 %v585_v25  ;;  %559 = vadd.xlane.f32.xlu0 %v558_v26  ;;  %v582_v28 = vsel %vm443_vm1, %v1555_v27, 0.0 }
 0x211   : > { %583 = vadd.xlane.f32.xlu0 %v582_v28 }
 0x27e   : > { %v545_v29 = vpop.xlane.xlu1 %544 }
 0x27f   : > { %970 = vrcp.f32 %v545_v29 }
 0x282   : > { %v569_v30 = vpop.xlane.xlu1 %568  ;;  %v542_v31 = vpop.xlane.xlu0 %541 }
 0x283   : > { %972 = vrcp.f32 %v569_v30 }
 0x284   : > { %974 = vrcp.f32 %v542_v31 }
 0x286   : > { %v551_v32 = vpop.xlane.xlu1 %550  ;;  %v566_v33 = vpop.xlane.xlu0 %565 }
 0x287   : > { %976 = vrcp.f32 %v551_v32 }
 0x288   : > { %978 = vrcp.f32 %v566_v33 }
 0x289   : > { %v971_v34 = vpop.eup %970 }
 0x28a   : > { %v605_v35 = vmul.f32 %v971_v34, %v1487_v36  ;;  %v575_v37 = vpop.xlane.xlu1 %574  ;;  %v548_v38 = vpop.xlane.xlu0 %547 }
 0x28b   : > { %980 = vrcp.f32 %v575_v37 }
 0x28c   : > { %621 = vst.msk [vmem:[%s1562_s18 + $0x8] sm:$0xff] %vm443_vm1, %v605_v35  ;;  %982 = vrcp.f32 %v548_v38 }
 0x28d   : > { %v973_v39 = vpop.eup %972 }
 0x28e   : > { %v975_v41 = vpop.eup %974  ;;  %v613_v42 = vmul.f32 %v973_v39, %v1489_v40  ;;  %v557_v43 = vpop.xlane.xlu1 %556 }
 0x28f   : > { %v572_v44 = vpop.xlane.xlu0 %571  ;;  %v604_v36 = vmul.f32 %v975_v41, %v1495_v45  ;;  %984 = vrcp.f32 %v557_v43 }
 0x290   : > { %629 = vst.msk [vmem:[%s1562_s18 + $0x48] sm:$0xff] %vm443_vm1, %v613_v42  ;;  %986 = vrcp.f32 %v572_v44 }
 0x291   : > { %v977_v46 = vpop.eup %976  ;;  %620 = vst.msk [vmem:[%s1562_s18] sm:$0xff] %vm443_vm1, %v604_v36 }
 0x292   : > { %v979_v47 = vpop.eup %978  ;;  %v607_v48 = vmul.f32 %v977_v46, %v1499_v50  ;;  %v581_v49 = vpop.xlane.xlu1 %580 }
 0x293   : > { %v554_v51 = vpop.xlane.xlu0 %553  ;;  %v612_v40 = vmul.f32 %v979_v47, %v1505_v55  ;;  %988 = vrcp.f32 %v581_v49 }
 0x294   : > { %623 = vst.msk [vmem:[%s1562_s18 + $0x18] sm:$0xff] %vm443_vm1, %v607_v48  ;;  %990 = vrcp.f32 %v554_v51 }
 0x295   : > { %v981_v45 = vpop.eup %980  ;;  %628 = vst.msk [vmem:[%s1562_s18 + $0x40] sm:$0xff] %vm443_vm1, %v612_v40 }
 0x296   : > { %v983_v52 = vpop.eup %982  ;;  %v615_v53 = vmul.f32 %v981_v45, %v1513_v63  ;;  %v563_v54 = vpop.xlane.xlu1 %562 }
 0x297   : > { %v578_v56 = vpop.xlane.xlu0 %577  ;;  %v606_v50 = vmul.f32 %v983_v52, %v1515_v0  ;;  %992 = vrcp.f32 %v563_v54 }
 0x298   : > { %631 = vst.msk [vmem:[%s1562_s18 + $0x58] sm:$0xff] %vm443_vm1, %v615_v53  ;;  %994 = vrcp.f32 %v578_v56 }
 0x299   : > { %v985_v55 = vpop.eup %984  ;;  %622 = vst.msk [vmem:[%s1562_s18 + $0x10] sm:$0xff] %vm443_vm1, %v606_v50 }
 0x29a   : > { %v987_v57 = vpop.eup %986  ;;  %v609_v58 = vmul.f32 %v985_v55, %v1525_v12  ;;  %v587_v59 = vpop.xlane.xlu1 %586 }
 0x29b   : > { %v560_v60 = vpop.xlane.xlu0 %559  ;;  %v614_v61 = vmul.f32 %v987_v57, %v1523_v11  ;;  %996 = vrcp.f32 %v587_v59 }
 0x29c   : > { %625 = vst.msk [vmem:[%s1562_s18 + $0x28] sm:$0xff] %vm443_vm1, %v609_v58  ;;  %998 = vrcp.f32 %v560_v60 }
 0x29d   : > { %v989_v62 = vpop.eup %988  ;;  %630 = vst.msk [vmem:[%s1562_s18 + $0x50] sm:$0xff] %vm443_vm1, %v614_v61 }
 0x29e   : > { %v991_v63 = vpop.eup %990  ;;  %v617_v0 = vmul.f32 %v989_v62, %v1533_v16 }
 0x29f   : > { %v584_v1 = vpop.xlane.xlu0 %583  ;;  %v608_v2 = vmul.f32 %v991_v63, %v1531_v8 }
 0x2a0   : > { %1000 = vrcp.f32 %v584_v1  ;;  %633 = vst.msk [vmem:[%s1562_s18 + $0x68] sm:$0xff] %vm443_vm1, %v617_v0 }
 0x2a1   : > { %v993_v5 = vpop.eup %992  ;;  %624 = vst.msk [vmem:[%s1562_s18 + $0x20] sm:$0xff] %vm443_vm1, %v608_v2 }
 0x2a2   : > { %v995_v6 = vpop.eup %994  ;;  %v611_v9 = vmul.f32 %v993_v5, %v1541_v20 }
 0x2a3   : > { %v616_v3 = vmul.f32 %v995_v6, %v1539_v19 }
 0x2a4   : > { %627 = vst.msk [vmem:[%s1562_s18 + $0x38] sm:$0xff] %vm443_vm1, %v611_v9 }
 0x2a5   : > { %v997_v4 = vpop.eup %996  ;;  %632 = vst.msk [vmem:[%s1562_s18 + $0x60] sm:$0xff] %vm443_vm1, %v616_v3 }
 0x2a6   : > { %v999_v10 = vpop.eup %998  ;;  %v619_v11 = vmul.f32 %v997_v4, %v1549_v24 }
 0x2a7   : > { %v610_v12 = vmul.f32 %v999_v10, %v1547_v23 }
 0x2a8   : > { %635 = vst.msk [vmem:[%s1562_s18 + $0x78] sm:$0xff] %vm443_vm1, %v619_v11 }
 0x2a9   : > { %626 = vst.msk [vmem:[%s1562_s18 + $0x30] sm:$0xff] %vm443_vm1, %v610_v12 }
 0x2aa   : > { %v1001_v13 = vpop.eup %1000 }
 0x2ab   : > { %v618_v14 = vmul.f32 %v1001_v13, %v1555_v27 }
 0x2ad   : > { %634 = vst.msk [vmem:[%s1562_s18 + $0x70] sm:$0xff] %vm443_vm1, %v618_v14 }
 0x2ae   : > { %1101 = shalt.err (!%p1098_p1)
}
 0x2af   : > { %s1102_s11 = scalar_lea.hbm %s1613_s28, 2048  ;;  %s1106_s27 = scalar_lea.hbm %s1665_s3, 4096 }
 0x2b0   : > { %p1103_p13 = scmp.ne.s32.totalorder %s1613_s28, %s1102_s11  ;;  %p1107_p4 = scmp.lt.u32.totalorder %s1613_s28, %s1665_s3 }
 0x2b1   : > { %p1108_p5 = scmp.lt.u32.totalorder %s1106_s27, %s1102_s11  ;;  %p1110_p11 = scmp.lt.u32.totalorder %s1102_s11, %s1613_s28 }
 0x2b2   : > { %p1104_p6 = pnand %p1103_p13, %p1679_p0 }
 0x2b3   : > { %p1109_p8 = por %p1108_p5, %p1107_p4 }
 0x2b4   : > { %p1105_p10 = pneg %p1104_p6 }
 0x2b5   : > { %p1111_p2 = por %p1110_p11, %p1109_p8 }
 0x2b7   : > { %p1112_p3 = pnand %p1111_p2, %p1105_p10 }
 0x2b9   : > { %1115 = shalt.err (!%p1112_p3)
}
 0x2ba   : > { %s1166_s22 = smov 128   ;;  %s1167_s18 = smov 8  }
 0x2bb   : > { %877 = dma.vmem_to_hbm [thread:$0]  (%p1679_p0), %s1615_s7, 2048, %s1613_s28, %s637_s16, %s1166_s22, %s1166_s22, %s1167_s18  }
 0x2bc PF: > { %s665_s20 = sand.u32 1, %s1146_s12   ;;  %p1680_p7 = scmp.ne.s32.totalorder %s1670_s19, 0 }
 0x2bd   : > { %p1681_p9 = scmp.ge.s32.totalorder %s1158_s15, 2  ;;  %s666_s8 = scalar_lea.sflag [#allocation4], %s665_s20 }
 0x2bf   : > { %p891_p12 = pnand %p1681_p9, %p1680_p7 }
 0x2c1   : > { %1141 = dma.done.wait (!%p891_p12), %s666_s8, 2048  }
 0x2c2   : > { %1143 = vsyncadd (!%p891_p12), %s666_s8, 4294965248  ;;  %p17_p1 = scmp.ge.s32.totalorder %s1302_s5, 4   ;;  %s1682_s12 = smov %s1150_s13 }
 0x2c3   : > { %s1683_s13 = smov %s1154_s14  ;;  %s1684_s14 = smov %s1318_s10 }
 0x2c4   : > { %s1685_s15 = smov %s1302_s5  ;;  %19 = sbr.rel (!%p17_p1) target bundleno = 6 (0x6), region = 85 }
 0x2cb   :  { %671 = vsyncpa [#allocation3], 1 }
 0x2cc   :  { %673 = vsyncpa [#allocation3 + $0x1], 1 }
 0x2cd   :  { %674 = vsyncpa [#allocation6], 1 }
 0x2ce   :  { %675 = vsyncpa [#allocation4], 1 }
 0x2cf   :  { %677 = vsyncpa [#allocation4 + $0x1], 1 }

</bundles_post_ra>
